<compile_context>
chip_gen: v7x
topology: tpu7x:2x2x1
jax: 0.10.0
libtpu: 0.0.40
codegen_flags: <defaults>
</compile_context>

<pallas_src>
import functools

import jax
import jax.numpy as jnp
from jax import lax
from jax.experimental import pallas as pl
from jax.experimental.pallas import tpu as pltpu

_LANES = 128


def _round_up(x, m):
    return (x + m - 1) // m * m


def _bce_with_logits_kernel(x_ref, y_ref, o_ref, *, tm, n_valid, needs_mask):
    x = x_ref[...].astype(jnp.float32)          # (tm, 128)
    y = y_ref[...].astype(jnp.float32)

    # Numerically stable BCE-with-logits (same form PyTorch uses):
    #   loss = max(x, 0) - x*y + log(1 + exp(-|x|))
    elem = jnp.maximum(x, 0.0) - x * y + jnp.log1p(jnp.exp(-jnp.abs(x)))

    if needs_mask:
        # Mask out zero-padded tail elements (flat index >= n_valid).
        base = pl.program_id(0) * (tm * _LANES)
        r = lax.broadcasted_iota(jnp.int32, (tm, _LANES), 0)
        c = lax.broadcasted_iota(jnp.int32, (tm, _LANES), 1)
        elem = jnp.where(base + r * _LANES + c < n_valid, elem, 0.0)

    # One sublane reduce per (big) tile — amortized over tm*128 elements —
    # written lane-dense into row 0 of this block's (8, 128) output slot.
    partial = jnp.sum(elem, axis=0, keepdims=True)                 # (1, 128)
    row_id = lax.broadcasted_iota(jnp.int32, (8, _LANES), 0)
    o_ref[0] = jnp.where(
        row_id == 0, jnp.broadcast_to(partial, (8, _LANES)), 0.0)


def bce_with_logits_loss(logits, targets, *, block_rows=4096):
    """Mean-reduced BCEWithLogitsLoss computed by a Pallas TPU kernel.

    block_rows=4096 -> 4096*128*4 B = 2 MiB per f32 input tile; with default
    double buffering that is <= 8 MiB of input VMEM, fitting all of
    v5e / v6e / v7x comfortably.
    """
    assert logits.shape == targets.shape
    n = logits.size
    assert n > 0

    rows = -(-n // _LANES)                        # ceil(n / 128)
    tm = min(block_rows, _round_up(rows, 8))      # tile rows (multiple of 8)
    rows_padded = _round_up(rows, tm)
    n_padded = rows_padded * _LANES
    pad = n_padded - n

    x = logits.reshape(-1)
    y = targets.reshape(-1)
    if pad:
        # TODO(synk): tile-aligned shapes take the zero-copy path; unaligned
        # shapes pay one XLA pad copy here (padded elements masked in-kernel).
        x = jnp.pad(x, (0, pad))
        y = jnp.pad(y, (0, pad))
    x = x.reshape(rows_padded, _LANES)
    y = y.reshape(rows_padded, _LANES)

    num_blocks = rows_padded // tm
    kernel = functools.partial(
        _bce_with_logits_kernel, tm=tm, n_valid=n, needs_mask=pad > 0)

    partials = pl.pallas_call(
        kernel,
        out_shape=jax.ShapeDtypeStruct((num_blocks, 8, _LANES), jnp.float32),
        grid=(num_blocks,),
        in_specs=[
            pl.BlockSpec((tm, _LANES), lambda i: (i, 0)),
            pl.BlockSpec((tm, _LANES), lambda i: (i, 0)),
        ],
        out_specs=pl.BlockSpec((1, 8, _LANES), lambda i: (i, 0, 0)),
        compiler_params=pltpu.CompilerParams(
            dimension_semantics=("parallel",),
            vmem_limit_bytes=32 * 1024 * 1024,
        ),
    )(x, y)

    # Tiny finalize in plain JAX: sum per-block partials, divide by true count.
    return jnp.sum(partials) / jnp.float32(n)


class Network:
    """JAX/Pallas analogue of the abstract PyTorch `Network` base class."""

    def __init__(self, model_config=None):
        # The only member the PyTorch __init__ creates is the loss fn.
        self.loss_fn = bce_with_logits_loss

    def forward(self, *args, **kwargs):
        raise NotImplementedError


def _reference_bce(logits, targets):
    x = logits.astype(jnp.float32)
    y = targets.astype(jnp.float32)
    elem = jnp.maximum(x, 0.0) - x * y + jnp.log1p(jnp.exp(-jnp.abs(x)))
    return jnp.mean(elem)


if __name__ == "__main__":
    key = jax.random.PRNGKey(0)
    k1, k2, k3, k4 = jax.random.split(key, 4)

    net = Network(model_config=None)

    # Case 1: small aligned multi-label setup (batch=16, num_labels=256),
    # bf16 targets (0/1 are exact in bf16) to halve target HBM traffic.
    B, L = 16, 256
    logits = jax.random.normal(k1, (B, L), dtype=jnp.float32)
    targets_f32 = (jax.random.uniform(k2, (B, L)) < 0.3).astype(jnp.float32)
    loss = jax.block_until_ready(
        net.loss_fn(logits, targets_f32.astype(jnp.bfloat16)))
    ref = jax.block_until_ready(_reference_bce(logits, targets_f32))
    assert jnp.allclose(loss, ref, rtol=1e-5, atol=1e-5), (loss, ref)

    # Case 2: ragged shape -> exercises the pad + in-kernel mask path.
    B2, L2 = 7, 300
    logits2 = jax.random.normal(k3, (B2, L2), dtype=jnp.float32)
    targets2 = (jax.random.uniform(k4, (B2, L2)) < 0.3).astype(jnp.float32)
    loss2 = jax.block_until_ready(net.loss_fn(logits2, targets2))
    ref2 = jax.block_until_ready(_reference_bce(logits2, targets2))
    assert jnp.allclose(loss2, ref2, rtol=1e-5, atol=1e-5), (loss2, ref2)

    # Case 3: multi-block grid (small block_rows forces grid > 1) ->
    # exercises the per-block "parallel" partial-sum outputs.
    B3, L3 = 32, 2048
    logits3 = jax.random.normal(k1, (B3, L3), dtype=jnp.float32)
    targets3 = (jax.random.uniform(k2, (B3, L3)) < 0.3).astype(jnp.bfloat16)
    loss3 = jax.block_until_ready(
        bce_with_logits_loss(logits3, targets3, block_rows=128))
    ref3 = jax.block_until_ready(
        _reference_bce(logits3, targets3.astype(jnp.float32)))
    assert jnp.allclose(loss3, ref3, rtol=1e-5, atol=1e-5), (loss3, ref3)

    print("KERNEL_OK")
</pallas_src>

<mosaic_0001>
module attributes {stable_mosaic.version = 11 : i64} {
  func.func @_bce_with_logits_kernel(%arg0: i32, %arg1: memref<32x128xf32, #tpu.memory_space<vmem>>, %arg2: memref<32x128xbf16, #tpu.memory_space<vmem>>, %arg3: memref<1x8x128xf32, #tpu.memory_space<vmem>>) attributes {dimension_semantics = [#tpu.dimension_semantics<parallel>], iteration_bounds = array<i64: 1>, scalar_prefetch = 0 : i64, scratch_operands = 0 : i64, tpu.core_type = #tpu.core_type<tc>, window_params = [{transform_indices = @transform_0, window_bounds = array<i64: 32, 128>}, {transform_indices = @transform_1, window_bounds = array<i64: 32, 128>}, {transform_indices = @transform_2, window_bounds = array<i64: 1, 8, 128>}]} {
    %c0 = arith.constant 0 : index
    %c0_0 = arith.constant 0 : index
    %0 = vector.load %arg1[%c0, %c0_0] : memref<32x128xf32, #tpu.memory_space<vmem>>, vector<32x128xf32>
    %c0_1 = arith.constant 0 : index
    %c0_2 = arith.constant 0 : index
    %1 = vector.load %arg2[%c0_1, %c0_2] : memref<32x128xbf16, #tpu.memory_space<vmem>>, vector<32x128xbf16>
    %2 = arith.extf %1 : vector<32x128xbf16> to vector<32x128xf32>
    %cst = arith.constant 0.000000e+00 : f32
    %3 = vector.broadcast %cst : f32 to vector<32x128xf32>
    %4 = arith.maximumf %0, %3 : vector<32x128xf32>
    %5 = arith.mulf %0, %2 : vector<32x128xf32>
    %6 = arith.subf %4, %5 : vector<32x128xf32>
    %7 = math.absf %0 : vector<32x128xf32>
    %cst_3 = arith.constant 0.000000e+00 : f32
    %8 = vector.broadcast %cst_3 : f32 to vector<32x128xf32>
    %9 = arith.subf %8, %7 : vector<32x128xf32>
    %10 = math.exp %9 : vector<32x128xf32>
    %11 = math.log1p %10 : vector<32x128xf32>
    %12 = arith.addf %6, %11 : vector<32x128xf32>
    %cst_4 = arith.constant dense<0.000000e+00> : vector<128xf32>
    %13 = vector.multi_reduction <add>, %12, %cst_4 [0] : vector<32x128xf32> to vector<128xf32>
    %14 = vector.shape_cast %13 : vector<128xf32> to vector<1x128xf32>
    %15 = tpu.iota {dimensions = array<i32: 0>} : vector<8x128xi32>
    %c0_i32 = arith.constant 0 : i32
    %16 = vector.broadcast %c0_i32 : i32 to vector<8x128xi32>
    %17 = arith.cmpi eq, %15, %16 : vector<8x128xi32>
    %18 = vector.shape_cast %14 : vector<1x128xf32> to vector<1x128xf32>
    %19 = vector.broadcast %18 : vector<1x128xf32> to vector<8x128xf32>
    %cst_5 = arith.constant 0.000000e+00 : f32
    %20 = vector.broadcast %cst_5 : f32 to vector<8x128xf32>
    %21 = arith.select %17, %19, %20 : vector<8x128xi1>, vector<8x128xf32>
    %c0_6 = arith.constant 0 : index
    %c0_7 = arith.constant 0 : index
    %c0_8 = arith.constant 0 : index
    %22 = vector.load %arg3[%c0_6, %c0_7, %c0_8] : memref<1x8x128xf32, #tpu.memory_space<vmem>>, vector<1x8x128xf32>
    %23 = vector.shape_cast %22 : vector<1x8x128xf32> to vector<8x128xf32>
    %24 = vector.shape_cast %21 : vector<8x128xf32> to vector<1x8x128xf32>
    tpu.vector_store %arg3[%c0_6, %c0_7, %c0_8], %24 {strides = array<i32>} : memref<1x8x128xf32, #tpu.memory_space<vmem>>, vector<1x8x128xf32>,
    return
  }
  func.func @transform_0(%arg0: i32) -> (i32, i32) {
    %c0_i32 = arith.constant 0 : i32
    %c0_i32_0 = arith.constant 0 : i32
    return %arg0, %c0_i32 : i32, i32
  }
  func.func @transform_1(%arg0: i32) -> (i32, i32) {
    %c0_i32 = arith.constant 0 : i32
    %c0_i32_0 = arith.constant 0 : i32
    return %arg0, %c0_i32 : i32, i32
  }
  func.func @transform_2(%arg0: i32) -> (i32, i32, i32) {
    %c0_i32 = arith.constant 0 : i32
    %c0_i32_0 = arith.constant 0 : i32
    %c0_i32_1 = arith.constant 0 : i32
    return %arg0, %c0_i32, %c0_i32_0 : i32, i32, i32
  }
}

</mosaic_0001>

<bundles_post_ra>
// kernel: tpu_custom_call.1
= control target key start
LH: loop header
LB: loop body
LE: loop exit
PB: predicated region body
PF: predicated region fallthrough
CT: control target
= control target key end

     0   :  { %7 = vsyncpa [#allocation3], 0  ;;  %s339_s0 = inlined_call_operand.hbm [shape: f32[32,128], index: 0, kind: input, shape index: {}]   ;;  %s340_s1 = inlined_call_operand.hbm [shape: bf16[32,128], index: 1, kind: input, shape index: {}]   ;;  %s341_s2 = inlined_call_operand.hbm [shape: f32[1,8,128], index: 2, kind: output, shape index: {}]  }
   0x1   :  { %8 = vsyncpa [#allocation6], 0 }
   0x2   :  { %9 = vsyncpa [#allocation4], 0  ;;  %s254_s9 = smov [#allocation2]   ;;  %s182_s13 = scalar_lea.hbm %s339_s0, 512 }
   0x3   :  { %s15_s10 = sshll.u32 %s254_s9, 4  ;;  %p183_p0 = scmp.ne.s32.totalorder %s339_s0, %s182_s13  ;;  %s16_s10 = int_to_ptr.vmem [resolvable:$true] %s15_s10 }
   0x4   :  { %p186_p1 = scmp.lt.u32.totalorder %s182_s13, %s339_s0 }
   0x6   :  { %p188_p2 = pnand %p186_p1, %p183_p0 }
   0x8   :  { %191 = shalt.err (!%p188_p2)
}
   0x9   :  { %s192_s18 = scalar_lea.vmem %s16_s10, 512  ;;  %p197_p4 = scmp.lt.s32.totalorder %s16_s10, %s16_s10 }
   0xa   :  { %p193_p3 = scmp.ne.s32.totalorder %s16_s10, %s192_s18  ;;  %p198_p5 = scmp.lt.s32.totalorder %s192_s18, %s192_s18 }
   0xc   :  { %p199_p6 = por %p198_p5, %p197_p4 }
   0xe   :  { %p200_p7 = pnand %p199_p6, %p193_p3 }
  0x10   :  { %203 = shalt.err (!%p200_p7)
}
  0x11   :  { %s255_s19 = smov 128   ;;  %s256_s20 = smov 8  }
  0x12   :  { %21 = dma.hbm_to_vmem [thread:$0]  %s339_s0, 512, %s16_s10, [#allocation3], %s255_s19, %s255_s19, %s256_s20  }
  0x13   :  { %s257_s23 = smov [#allocation5]   ;;  %s204_s27 = scalar_lea.hbm %s340_s1, 256 }
  0x14   :  { %s27_s24 = sshll.u32 %s257_s23, 4  ;;  %p205_p8 = scmp.ne.s32.totalorder %s340_s1, %s204_s27  ;;  %s28_s24 = int_to_ptr.vmem [resolvable:$true] %s27_s24 }
  0x15   :  { %p208_p9 = scmp.lt.u32.totalorder %s204_s27, %s340_s1 }
  0x17   :  { %p210_p10 = pnand %p208_p9, %p205_p8 }
  0x19   :  { %213 = shalt.err (!%p210_p10)
}
  0x1a   :  { %s214_s4 = scalar_lea.vmem %s28_s24, 256  ;;  %p219_p12 = scmp.lt.s32.totalorder %s28_s24, %s28_s24 }
  0x1b   :  { %p215_p11 = scmp.ne.s32.totalorder %s28_s24, %s214_s4  ;;  %p220_p13 = scmp.lt.s32.totalorder %s214_s4, %s214_s4 }
  0x1d   :  { %p221_p0 = por %p220_p13, %p219_p12 }
  0x1f   :  { %p222_p1 = pnand %p221_p0, %p215_p11 }
  0x21   :  { %225 = shalt.err (!%p222_p1)
}
  0x22   :  { %s258_s0 = smov 64   ;;  %s259_s5 = smov 4  }
  0x23   :  { %33 = dma.hbm_to_vmem [thread:$0]  %s340_s1, 256, %s28_s24, [#allocation6], %s258_s0, %s258_s0, %s259_s5  }
  0x24   :  { %248 = dma.done.wait [#allocation3], 512  }
  0x25   :  { %249 = vsyncadd [#allocation3], 4294966784 }
  0x26   :  { %250 = dma.done.wait [#allocation6], 256  }
  0x27   :  { %251 = vsyncadd [#allocation6], 4294967040  ;;  %v40_v0 = vld [vmem:[#allocation2] sm:$0xff]  ;;  %v300_v1 = vld [vmem:[#allocation2 + $0x8] sm:$0xff]  ;;  %s260_s1 = smov [#allocation7]  }
  0x28   :  { %v302_v2 = vld [vmem:[#allocation2 + $0x10] sm:$0xff]  ;;  %v304_v3 = vld [vmem:[#allocation2 + $0x18] sm:$0xff]  ;;  %v64_v4 = vand.u32 2147483647, %v40_v0  ;;  %v65_v5 = vand.u32 2147483647, %v300_v1 }
  0x29   :  { %v66_v6 = vand.u32 2147483647, %v302_v2  ;;  %v67_v7 = vand.u32 2147483647, %v304_v3  ;;  %v151_v20 = vld [vmem:[#allocation5] sm:$0xff]   ;;  %v158_v24 = vld [vmem:[#allocation5 + $0x8] sm:$0xff]  }
  0x2a   :  { %v68_v8 = vsub.f32 0.0, %v64_v4  ;;  %v69_v9 = vsub.f32 0.0, %v65_v5  ;;  %v152_v26 = vunpack.c.l.bf16 %v151_v20  ;;  %v153_v29 = vunpack.c.h.bf16 %v151_v20  ;;  %s140_s8 = sshll.u32 %s260_s1, 4  ;;  %s141_s8 = int_to_ptr.vmem [resolvable:$true] %s140_s8 }
  0x2b   :  { %v70_v10 = vsub.f32 0.0, %v66_v6  ;;  %v71_v11 = vsub.f32 0.0, %v67_v7  ;;  %v156_v31 = vunpack.c.l.bf16 %v158_v24  ;;  %v157_v32 = vunpack.c.h.bf16 %v158_v24  ;;  %s226_s9 = scalar_lea.vmem %s141_s8, 128  ;;  %p231_p3 = scmp.lt.s32.totalorder %s141_s8, %s141_s8 }
  0x2c   :  { %v72_v12 = vmul.f32 1.442695, %v68_v8  ;;  %v74_v13 = vmul.f32 1.442695, %v69_v9  ;;  %v52_v35 = vmax.f32 %v40_v0, 0.0  ;;  %v56_v36 = vmul.f32 %v152_v26, %v40_v0  ;;  %p227_p2 = scmp.ne.s32.totalorder %s141_s8, %s226_s9  ;;  %p232_p4 = scmp.lt.s32.totalorder %s226_s9, %s226_s9 }
  0x2d   :  { %v76_v14 = vmul.f32 1.442695, %v70_v10  ;;  %v78_v15 = vmul.f32 1.442695, %v71_v11  ;;  %v53_v39 = vmax.f32 %v300_v1, 0.0  ;;  %v57_v40 = vmul.f32 %v153_v29, %v300_v1 }
  0x2e   :  { %166 = vpow2.f32 %v72_v12  ;;  %v54_v43 = vmax.f32 %v302_v2, 0.0  ;;  %v58_v44 = vmul.f32 %v156_v31, %v302_v2  ;;  %v55_v46 = vmax.f32 %v304_v3, 0.0  ;;  %p233_p5 = por %p232_p4, %p231_p3 }
  0x2f   :  { %168 = vpow2.f32 %v74_v13  ;;  %v59_v47 = vmul.f32 %v157_v32, %v304_v3  ;;  %v60_v51 = vsub.f32 %v52_v35, %v56_v36  ;;  %v61_v56 = vsub.f32 %v53_v39, %v57_v40 }
  0x30   :  { %170 = vpow2.f32 %v76_v14  ;;  %v62_v61 = vsub.f32 %v54_v43, %v58_v44  ;;  %p234_p6 = pnand %p233_p5, %p227_p2 }
  0x31   :  { %172 = vpow2.f32 %v78_v15  ;;  %v63_v3 = vsub.f32 %v55_v46, %v59_v47 }
  0x38   :  { %v167_v16 = vpop.eup %166 }
  0x39   :  { %v169_v17 = vpop.eup %168  ;;  %v80_v18 = vadd.f32 1.0, %v167_v16  ;;  %v83_v25 = vmul.f32 -0.5, %v167_v16  ;;  %v86_v37 = vand.u32 2147483647, %v167_v16 }
  0x3a   :  { %v171_v19 = vpop.eup %170  ;;  %v89_v21 = vadd.f32 1.0, %v169_v17  ;;  %v92_v27 = vmul.f32 -0.5, %v169_v17  ;;  %v95_v41 = vand.u32 2147483647, %v169_v17 }
  0x3b   :  { %v173_v22 = vpop.eup %172  ;;  %174 = vlog2.f32 %v80_v18  ;;  %v98_v23 = vadd.f32 1.0, %v171_v19  ;;  %v101_v30 = vmul.f32 -0.5, %v171_v19  ;;  %v84_v33 = vadd.f32 1.0, %v83_v25 }
  0x3c   :  { %176 = vlog2.f32 %v89_v21  ;;  %v107_v28 = vadd.f32 1.0, %v173_v22  ;;  %v110_v34 = vmul.f32 -0.5, %v173_v22  ;;  %v93_v38 = vadd.f32 1.0, %v92_v27 }
  0x3d   :  { %178 = vlog2.f32 %v98_v23  ;;  %v102_v42 = vadd.f32 1.0, %v101_v30  ;;  %v104_v45 = vand.u32 2147483647, %v171_v19  ;;  %v85_v48 = vmul.f32 %v167_v16, %v84_v33 }
  0x3e   :  { %180 = vlog2.f32 %v107_v28  ;;  %v111_v49 = vadd.f32 1.0, %v110_v34  ;;  %vm315_vm0 = vcmp.lt.f32.partialorder %v86_v37, 0.0004427343  ;;  %v94_v53 = vmul.f32 %v169_v17, %v93_v38 }
  0x3f   :  { %v113_v54 = vand.u32 2147483647, %v173_v22  ;;  %vm319_vm1 = vcmp.lt.f32.partialorder %v95_v41, 0.0004427343  ;;  %v103_v59 = vmul.f32 %v171_v19, %v102_v42  ;;  %vm105_vm2 = vcmp.lt.f32.partialorder %v104_v45, 0.0004427343 }
  0x40   :  { %v112_v1 = vmul.f32 %v173_v22, %v111_v49  ;;  %v129_v16 = vlaneseq }
  0x41   :  { %vm114_vm3 = vcmp.lt.f32.partialorder %v113_v54, 0.0004427343 }
  0x42   :  { %v130_v19 = vshrl.u32 %v129_v16, 7 }
  0x44   :  { %vm131_vm4 = vcmp.eq.s32.totalorder %v130_v19, 0 }
  0x45   :  { %v175_v50 = vpop.eup %174 }
  0x46   :  { %v177_v55 = vpop.eup %176  ;;  %v82_v57 = vmul.f32 0.6931472, %v175_v50 }
  0x47   :  { %v179_v60 = vpop.eup %178  ;;  %v91_v62 = vmul.f32 0.6931472, %v177_v55 }
  0x48   :  { %v88_v63 = vsel %vm315_vm0, %v85_v48, %v82_v57  ;;  %v100_v0 = vmul.f32 0.6931472, %v179_v60  ;;  %v181_v2 = vpop.eup %180 }
  0x49   :  { %v97_v4 = vsel %vm319_vm1, %v94_v53, %v91_v62  ;;  %v116_v5 = vadd.f32 %v88_v63, %v60_v51  ;;  %v109_v7 = vmul.f32 0.6931472, %v181_v2 }
  0x4a   :  { %v106_v6 = vsel %vm105_vm2, %v103_v59, %v100_v0  ;;  %v117_v8 = vadd.f32 %v97_v4, %v61_v56 }
  0x4b   :  { %v118_v9 = vadd.f32 %v106_v6, %v62_v61  ;;  %v115_v10 = vsel %vm114_vm3, %v112_v1, %v109_v7 }
  0x4c   :  { %v120_v11 = vadd.f32 %v117_v8, %v116_v5  ;;  %v119_v12 = vadd.f32 %v115_v10, %v63_v3 }
  0x4e   :  { %v121_v13 = vadd.f32 %v120_v11, %v118_v9 }
  0x50   :  { %v122_v14 = vadd.f32 %v121_v13, %v119_v12 }
  0x52   :  { %v123_v15 = vrot.slane %v122_v14, 4 }
  0x54   :  { %v124_v17 = vadd.f32 %v123_v15, %v122_v14 }
  0x56   :  { %v125_v18 = vrot.slane %v124_v17, 2 }
  0x58   :  { %v126_v20 = vadd.f32 %v125_v18, %v124_v17 }
  0x5a   :  { %v127_v21 = vrot.slane %v126_v20, 1 }
  0x5c   :  { %v128_v22 = vadd.f32 %v127_v21, %v126_v20 }
  0x5e   :  { %v132_v23 = vsel %vm131_vm4, %v128_v22, 0.0 }
  0x5f   :  { %133 = vst [vmem:[#allocation7] sm:$0xff] %v132_v23 }
  0x60   :  { %237 = shalt.err (!%p234_p6)
}
  0x61   :  { %s238_s12 = scalar_lea.hbm %s341_s2, 128 }
  0x62   :  { %p239_p7 = scmp.ne.s32.totalorder %s341_s2, %s238_s12  ;;  %p242_p8 = scmp.lt.u32.totalorder %s238_s12, %s341_s2 }
  0x64   :  { %p244_p9 = pnand %p242_p8, %p239_p7 }
  0x66   :  { %247 = shalt.err (!%p244_p9)
}
  0x67   :  { %143 = dma.vmem_to_hbm [thread:$0]  %s141_s8, 128, %s341_s2, [#allocation4]  }
  0x68   :  { %252 = dma.done.wait [#allocation4], 128  }
  0x69   :  { %253 = vsyncadd [#allocation4], 4294967168 }
  0x6a   :  { %147 = vsyncpa [#allocation3], 1 }
  0x6b   :  { %148 = vsyncpa [#allocation6], 1 }
  0x6c   :  { %149 = vsyncpa [#allocation4], 1 }

</bundles_post_ra>
